<compile_context>
chip_gen: v7x
topology: tpu7x:2x2x1
jax: 0.10.0
libtpu: 0.0.40
codegen_flags: <defaults>
</compile_context>

<pallas_src>
import functools

import jax
import jax.numpy as jnp
from jax.experimental import pallas as pl
from jax.experimental.pallas import tpu as pltpu

_F32_EPS = float(jnp.finfo(jnp.float32).eps)


def _chip_info():
    """Returns (vmem_capacity_bytes, tensorcores_per_chip), conservative defaults."""
    vmem_cap = 128 * 1024 * 1024
    cores = 1
    try:
        info = pltpu.get_tpu_info()
        cap = getattr(info, "vmem_capacity_bytes", None)
        if cap:
            vmem_cap = int(cap)
        for attr in ("num_cores", "core_count", "num_tensorcores",
                     "tensorcores_per_chip"):
            val = getattr(info, attr, None)
            if isinstance(val, int) and val in (1, 2):
                cores = val
                break
    except Exception:  # pragma: no cover - hardware/driver dependent
        pass
    try:
        kind = jax.devices()[0].device_kind.lower()
        if "v7" in kind:                       # v7x: 2 TensorCores, 64 MiB VMEM/TC
            cores = max(cores, 2)
            vmem_cap = min(vmem_cap, 64 * 1024 * 1024)
    except Exception:  # pragma: no cover
        pass
    return vmem_cap, cores


def _sc_partial_kernel(x_ref, y_ref, num_ref, den_ref, *,
                       total_rows, steps_per_part, strip,
                       first_masked_block, need_mask):
    """Accumulates sum((y-x)^2) and sum(y^2) into resident (1, 8, lanes) refs."""
    p = pl.program_id(0)
    s = pl.program_id(1)

    @pl.when(s == 0)
    def _init():
        num_ref[...] = jnp.zeros_like(num_ref)
        den_ref[...] = jnp.zeros_like(den_ref)

    rows_blk, lanes = x_ref.shape
    n_strips = rows_blk // strip
    fold = strip // 8
    unroll = max(1, min(4, n_strips))
    blk = p * steps_per_part + s          # logical (unclamped) block index

    def _accumulate(masked):
        def body(i, carry):
            acc_n, acc_d = carry
            r0 = pl.multiple_of(i * strip, strip)
            x = x_ref[pl.ds(r0, strip), :].astype(jnp.float32)
            y = y_ref[pl.ds(r0, strip), :].astype(jnp.float32)
            d = y - x
            dd = d * d
            yy = y * y
            if masked:
                # Rows past the logical end of the input (ragged tail of the
                # last block or clamped padding grid steps) are zeroed with a
                # select, so garbage/NaN from padded reads never leaks.
                row0 = blk * rows_blk + r0
                ridx = row0 + jax.lax.broadcasted_iota(jnp.int32, (strip, 1), 0)
                valid = ridx < total_rows
                dd = jnp.where(valid, dd, 0.0)
                yy = jnp.where(valid, yy, 0.0)
            return acc_n + dd, acc_d + yy

        acc0 = (jnp.zeros((strip, lanes), jnp.float32),
                jnp.zeros((strip, lanes), jnp.float32))
        acc_n, acc_d = jax.lax.fori_loop(0, n_strips, body, acc0, unroll=unroll)
        if fold > 1:
            acc_n = jnp.sum(acc_n.reshape(fold, 8, lanes), axis=0)
            acc_d = jnp.sum(acc_d.reshape(fold, 8, lanes), axis=0)
        num_ref[0] += acc_n
        den_ref[0] += acc_d

    if not need_mask:
        _accumulate(masked=False)
    elif first_masked_block <= 0:
        _accumulate(masked=True)
    else:
        # Mask off the hot path: only blocks at/after the tail run the masked
        # variant; everything else takes the unmasked fast path.
        @pl.when(blk < first_masked_block)
        def _fast():
            _accumulate(masked=False)

        @pl.when(blk >= first_masked_block)
        def _tail():
            _accumulate(masked=True)


def spectral_convergence_loss(x_mag, y_mag, epsilon: float = _F32_EPS):
    """Pallas implementation of SpectralConvergenceLoss.forward.

    Args:
      x_mag: (B, frames, freq) predicted magnitude spectrogram.
      y_mag: (B, frames, freq) groundtruth magnitude spectrogram.
    Returns:
      Scalar float32 loss.
    """
    assert x_mag.shape == y_mag.shape, "x_mag / y_mag shape mismatch"
    assert x_mag.dtype == y_mag.dtype, "x_mag / y_mag dtype mismatch"

    total_elems = 1
    for dim in x_mag.shape:
        total_elems *= int(dim)

    # Lane-dense zero-copy reshape when the element count allows it; otherwise
    # fall back to (rows, last_dim) with the full last axis on lanes.
    lanes = None
    for cand in (512, 256, 128):
        if total_elems % cand == 0:
            lanes = cand
            break
    if lanes is None:
        lanes = int(x_mag.shape[-1])
    rows = total_elems // lanes
    x2 = x_mag.reshape(rows, lanes)     # contiguous reshape, no copy
    y2 = y_mag.reshape(rows, lanes)

    itemsize = jnp.dtype(x_mag.dtype).itemsize
    sub = 8 * max(1, 4 // itemsize)               # sublane granularity
    lanes_padded = pl.cdiv(lanes, 128) * 128      # VMEM pads the lane axis

    vmem_cap, num_cores = _chip_info()
    if vmem_cap <= 64 * 1024 * 1024:              # v7x-class (64 MiB VMEM / TC)
        vmem_limit = 48 * 1024 * 1024
        target_block_bytes = 6 * 1024 * 1024
    else:                                         # v5e / v6e (128 MiB VMEM)
        vmem_limit = 64 * 1024 * 1024
        target_block_bytes = 8 * 1024 * 1024

    # Block sizing: the double-buffered pipeline holds 2 inputs x 2 buffers of
    # (rows_per_block, lanes_padded) each; temporaries stay in vregs.
    cap_rows = max(sub, (target_block_bytes // (lanes_padded * itemsize)) // sub * sub)
    rows_pad = pl.cdiv(rows, sub) * sub
    rows_per_block = min(cap_rows, rows_pad)

    # Strip size for the in-kernel accumulation loop: ~8K f32 elements per
    # array so x, y, d + both accumulator carries fit in vregs.
    desired_strip = max(sub, min(8192 // max(lanes, 1), 256) // sub * sub)
    strip = max(sub, min(desired_strip, rows_per_block) // sub * sub)
    rows_per_block = max(strip, rows_per_block // strip * strip)

    total_blocks = pl.cdiv(rows, rows_per_block)

    # Split row blocks across TensorCores only on 2-core chips (v7x).
    num_parts = 2 if (num_cores >= 2 and total_blocks >= 2) else 1
    if num_parts == 2 and total_blocks % 2 == 1:
        # Make the split exact (even block count) where possible so neither
        # core has to re-read (and fully mask) a duplicated padding block.
        rpb2 = max(strip, pl.cdiv(pl.cdiv(rows, total_blocks + 1), strip) * strip)
        if pl.cdiv(rows, rpb2) % 2 == 0:
            rows_per_block = rpb2
            total_blocks = pl.cdiv(rows, rows_per_block)

    steps_per_part = pl.cdiv(total_blocks, num_parts)
    last_block = total_blocks - 1
    covered_rows = num_parts * steps_per_part * rows_per_block
    need_mask = covered_rows != rows
    first_masked_block = (
        total_blocks if rows % rows_per_block == 0 else total_blocks - 1)

    def in_map(p, s):
        b = p * steps_per_part + s
        # Clamp so padding grid steps re-read (and fully mask) the last real
        # block instead of issuing a fully out-of-bounds DMA.
        return (jnp.minimum(b, last_block), 0)

    kernel = functools.partial(
        _sc_partial_kernel,
        total_rows=rows,
        steps_per_part=steps_per_part,
        strip=strip,
        first_masked_block=first_masked_block,
        need_mask=need_mask,
    )

    cost = pl.CostEstimate(
        flops=5 * total_elems,
        transcendentals=0,
        bytes_accessed=2 * total_elems * itemsize + 2 * num_parts * 8 * lanes * 4,
    )

    grid_spec = pltpu.PrefetchScalarGridSpec(
        num_scalar_prefetch=0,
        grid=(num_parts, steps_per_part),
        in_specs=(
            pl.BlockSpec((rows_per_block, lanes), in_map),
            pl.BlockSpec((rows_per_block, lanes), in_map),
        ),
        out_specs=(
            pl.BlockSpec((1, 8, lanes), lambda p, s: (p, 0, 0)),
            pl.BlockSpec((1, 8, lanes), lambda p, s: (p, 0, 0)),
        ),
    )
    out_shape = (
        jax.ShapeDtypeStruct((num_parts, 8, lanes), jnp.float32),
        jax.ShapeDtypeStruct((num_parts, 8, lanes), jnp.float32),
    )

    # Dimension semantics: on 2-core chips prefer an explicit per-core split
    # of the leading axis; fall back to the standard megacore "parallel"
    # mapping and finally to a plain serial loop if unavailable.
    candidates = []
    if num_parts > 1:
        core_parallel = getattr(pltpu, "CORE_PARALLEL", None)
        if core_parallel is not None:
            candidates.append((core_parallel, pltpu.ARBITRARY))
        candidates.append((pltpu.PARALLEL, pltpu.ARBITRARY))
    candidates.append((pltpu.ARBITRARY, pltpu.ARBITRARY))

    last_err = None
    for sem in candidates:
        try:
            num_part, den_part = pl.pallas_call(
                kernel,
                out_shape=out_shape,
                grid_spec=grid_spec,
                compiler_params=pltpu.CompilerParams(
                    dimension_semantics=sem,
                    vmem_limit_bytes=vmem_limit,
                ),
                cost_estimate=cost,
            )(x2, y2)
            break
        except Exception as err:  # pragma: no cover - hardware dependent
            last_err = err
    else:
        raise last_err

    # Tiny final reduce + sqrt/divide on the (num_parts, 8, lanes) partials.
    num = jnp.sqrt(jnp.sum(num_part))
    den = jnp.sqrt(jnp.sum(den_part)) + jnp.float32(epsilon)
    return num / den


def _reference(x_mag, y_mag, epsilon=_F32_EPS):
    num = jnp.sqrt(jnp.sum((y_mag - x_mag) ** 2))
    den = jnp.sqrt(jnp.sum(y_mag ** 2)) + epsilon
    return num / den


if __name__ == "__main__":
    key = jax.random.PRNGKey(0)
    kx, ky = jax.random.split(key)

    # (B, #frames, #freq_bins) — magnitude spectrograms are non-negative.
    B, FRAMES, FREQ = 2, 20, 64
    x_mag = jnp.abs(jax.random.normal(kx, (B, FRAMES, FREQ), dtype=jnp.float32))
    y_mag = jnp.abs(jax.random.normal(ky, (B, FRAMES, FREQ), dtype=jnp.float32))

    loss = jax.block_until_ready(spectral_convergence_loss(x_mag, y_mag))
    ref = _reference(x_mag, y_mag)
    assert jnp.allclose(loss, ref, rtol=1e-5, atol=1e-6), (loss, ref)

    # Exercise the in-kernel tail-masking path (row count not covered exactly).
    x_b = jnp.abs(jax.random.normal(kx, (2, 21, 64), dtype=jnp.float32))
    y_b = jnp.abs(jax.random.normal(ky, (2, 21, 64), dtype=jnp.float32))
    loss_b = jax.block_until_ready(spectral_convergence_loss(x_b, y_b))
    ref_b = _reference(x_b, y_b)
    assert jnp.allclose(loss_b, ref_b, rtol=1e-5, atol=1e-6), (loss_b, ref_b)

    # Exercise the native-dtype (bf16) path: no wrapper cast, in-kernel cast.
    x_h = x_mag.astype(jnp.bfloat16)
    y_h = y_mag.astype(jnp.bfloat16)
    loss_h = jax.block_until_ready(spectral_convergence_loss(x_h, y_h))
    ref_h = _reference(x_h.astype(jnp.float32), y_h.astype(jnp.float32))
    assert jnp.allclose(loss_h, ref_h, rtol=1e-2, atol=1e-3), (loss_h, ref_h)

    print("KERNEL_OK")
</pallas_src>

<mosaic_0001>
module attributes {stable_mosaic.version = 11 : i64} {
  func.func @_sc_partial_kernel(%arg0: i32, %arg1: i32, %arg2: memref<8x512xf32, #tpu.memory_space<vmem>>, %arg3: memref<8x512xf32, #tpu.memory_space<vmem>>, %arg4: memref<1x8x512xf32, #tpu.memory_space<vmem>>, %arg5: memref<1x8x512xf32, #tpu.memory_space<vmem>>) attributes {dimension_semantics = [#tpu.dimension_semantics<arbitrary>, #tpu.dimension_semantics<arbitrary>], iteration_bounds = array<i64: 1, 1>, scalar_prefetch = 0 : i64, scratch_operands = 0 : i64, tpu.core_type = #tpu.core_type<tc>, window_params = [{transform_indices = @transform_0, window_bounds = array<i64: 8, 512>}, {transform_indices = @transform_1, window_bounds = array<i64: 8, 512>}, {transform_indices = @transform_2, window_bounds = array<i64: 1, 8, 512>}, {transform_indices = @transform_3, window_bounds = array<i64: 1, 8, 512>}]} {
    %c0_i32 = arith.constant 0 : i32
    %0 = arith.cmpi eq, %arg1, %c0_i32 : i32
    %1 = arith.extui %0 : i1 to i32
    %c0_i32_0 = arith.constant 0 : i32
    %2 = arith.cmpi ne, %1, %c0_i32_0 : i32
    scf.if %2 {
      %cst_20 = arith.constant 0.000000e+00 : f32
      %45 = vector.broadcast %cst_20 : f32 to vector<1x8x512xf32>
      %c0_21 = arith.constant 0 : index
      %c0_22 = arith.constant 0 : index
      %c0_23 = arith.constant 0 : index
      %46 = vector.load %arg4[%c0_21, %c0_22, %c0_23] : memref<1x8x512xf32, #tpu.memory_space<vmem>>, vector<1x8x512xf32>
      tpu.vector_store %arg4[%c0_21, %c0_22, %c0_23], %45 {strides = array<i32>} : memref<1x8x512xf32, #tpu.memory_space<vmem>>, vector<1x8x512xf32>,
      %cst_24 = arith.constant 0.000000e+00 : f32
      %47 = vector.broadcast %cst_24 : f32 to vector<1x8x512xf32>
      %c0_25 = arith.constant 0 : index
      %c0_26 = arith.constant 0 : index
      %c0_27 = arith.constant 0 : index
      %48 = vector.load %arg5[%c0_25, %c0_26, %c0_27] : memref<1x8x512xf32, #tpu.memory_space<vmem>>, vector<1x8x512xf32>
      tpu.vector_store %arg5[%c0_25, %c0_26, %c0_27], %47 {strides = array<i32>} : memref<1x8x512xf32, #tpu.memory_space<vmem>>, vector<1x8x512xf32>,
    } else {
    }
    %c1_i32 = arith.constant 1 : i32
    %3 = arith.muli %arg0, %c1_i32 : i32
    %4 = arith.addi %3, %arg1 : i32
    %cst = arith.constant 0.000000e+00 : f32
    %5 = vector.broadcast %cst : f32 to vector<8x512xf32>
    %cst_1 = arith.constant 0.000000e+00 : f32
    %6 = vector.broadcast %cst_1 : f32 to vector<8x512xf32>
    %c0_i32_2 = arith.constant 0 : i32
    %c8_i32 = arith.constant 8 : i32
    %7 = arith.muli %c0_i32_2, %c8_i32 : i32
    %8 = tpu.assume_multiple %7, 8 : i32
    %9 = arith.index_cast %8 : i32 to index
    %c0 = arith.constant 0 : index
    %10 = vector.load %arg2[%9, %c0] : memref<8x512xf32, #tpu.memory_space<vmem>>, vector<8x512xf32>
    %11 = arith.index_cast %8 : i32 to index
    %c0_3 = arith.constant 0 : index
    %12 = vector.load %arg3[%11, %c0_3] : memref<8x512xf32, #tpu.memory_space<vmem>>, vector<8x512xf32>
    %13 = arith.subf %12, %10 : vector<8x512xf32>
    %14 = arith.mulf %13, %13 : vector<8x512xf32>
    %15 = arith.mulf %12, %12 : vector<8x512xf32>
    %c8_i32_4 = arith.constant 8 : i32
    %16 = arith.muli %4, %c8_i32_4 : i32
    %17 = arith.addi %16, %8 : i32
    %18 = tpu.iota {dimensions = array<i32: 0>} : vector<8x1xi32>
    %19 = vector.broadcast %17 : i32 to vector<8x1xi32>
    %20 = arith.addi %19, %18 : vector<8x1xi32>
    %c5_i32 = arith.constant 5 : i32
    %21 = vector.broadcast %c5_i32 : i32 to vector<8x1xi32>
    %22 = arith.cmpi slt, %20, %21 : vector<8x1xi32>
    %cst_5 = arith.constant 0.000000e+00 : f32
    %23 = vector.shape_cast %22 : vector<8x1xi1> to vector<8x1xi1>
    %24 = vector.broadcast %23 : vector<8x1xi1> to vector<8x512xi1>
    %25 = vector.broadcast %cst_5 : f32 to vector<8x512xf32>
    %26 = arith.select %24, %14, %25 : vector<8x512xi1>, vector<8x512xf32>
    %cst_6 = arith.constant 0.000000e+00 : f32
    %27 = vector.shape_cast %22 : vector<8x1xi1> to vector<8x1xi1>
    %28 = vector.broadcast %27 : vector<8x1xi1> to vector<8x512xi1>
    %29 = vector.broadcast %cst_6 : f32 to vector<8x512xf32>
    %30 = arith.select %28, %15, %29 : vector<8x512xi1>, vector<8x512xf32>
    %31 = arith.addf %5, %26 : vector<8x512xf32>
    %32 = arith.addf %6, %30 : vector<8x512xf32>
    %c1_i32_7 = arith.constant 1 : i32
    %c0_8 = arith.constant 0 : index
    %c0_9 = arith.constant 0 : index
    %c0_10 = arith.constant 0 : index
    %33 = vector.load %arg4[%c0_8, %c0_9, %c0_10] : memref<1x8x512xf32, #tpu.memory_space<vmem>>, vector<1x8x512xf32>
    %34 = vector.shape_cast %33 : vector<1x8x512xf32> to vector<8x512xf32>
    %35 = arith.addf %34, %31 : vector<8x512xf32>
    %c0_11 = arith.constant 0 : index
    %c0_12 = arith.constant 0 : index
    %c0_13 = arith.constant 0 : index
    %36 = vector.load %arg4[%c0_11, %c0_12, %c0_13] : memref<1x8x512xf32, #tpu.memory_space<vmem>>, vector<1x8x512xf32>
    %37 = vector.shape_cast %36 : vector<1x8x512xf32> to vector<8x512xf32>
    %38 = vector.shape_cast %35 : vector<8x512xf32> to vector<1x8x512xf32>
    tpu.vector_store %arg4[%c0_11, %c0_12, %c0_13], %38 {strides = array<i32>} : memref<1x8x512xf32, #tpu.memory_space<vmem>>, vector<1x8x512xf32>,
    %c0_14 = arith.constant 0 : index
    %c0_15 = arith.constant 0 : index
    %c0_16 = arith.constant 0 : index
    %39 = vector.load %arg5[%c0_14, %c0_15, %c0_16] : memref<1x8x512xf32, #tpu.memory_space<vmem>>, vector<1x8x512xf32>
    %40 = vector.shape_cast %39 : vector<1x8x512xf32> to vector<8x512xf32>
    %41 = arith.addf %40, %32 : vector<8x512xf32>
    %c0_17 = arith.constant 0 : index
    %c0_18 = arith.constant 0 : index
    %c0_19 = arith.constant 0 : index
    %42 = vector.load %arg5[%c0_17, %c0_18, %c0_19] : memref<1x8x512xf32, #tpu.memory_space<vmem>>, vector<1x8x512xf32>
    %43 = vector.shape_cast %42 : vector<1x8x512xf32> to vector<8x512xf32>
    %44 = vector.shape_cast %41 : vector<8x512xf32> to vector<1x8x512xf32>
    tpu.vector_store %arg5[%c0_17, %c0_18, %c0_19], %44 {strides = array<i32>} : memref<1x8x512xf32, #tpu.memory_space<vmem>>, vector<1x8x512xf32>,
    return
  }
  func.func @transform_0(%arg0: i32, %arg1: i32) -> (i32, i32) {
    %c1_i32 = arith.constant 1 : i32
    %0 = arith.muli %arg0, %c1_i32 : i32
    %1 = arith.addi %0, %arg1 : i32
    %c0_i32 = arith.constant 0 : i32
    %2 = arith.minsi %1, %c0_i32 : i32
    %c0_i32_0 = arith.constant 0 : i32
    %c0_i32_1 = arith.constant 0 : i32
    return %2, %c0_i32_0 : i32, i32
  }
  func.func @transform_1(%arg0: i32, %arg1: i32) -> (i32, i32) {
    %c1_i32 = arith.constant 1 : i32
    %0 = arith.muli %arg0, %c1_i32 : i32
    %1 = arith.addi %0, %arg1 : i32
    %c0_i32 = arith.constant 0 : i32
    %2 = arith.minsi %1, %c0_i32 : i32
    %c0_i32_0 = arith.constant 0 : i32
    %c0_i32_1 = arith.constant 0 : i32
    return %2, %c0_i32_0 : i32, i32
  }
  func.func @transform_2(%arg0: i32, %arg1: i32) -> (i32, i32, i32) {
    %c0_i32 = arith.constant 0 : i32
    %c0_i32_0 = arith.constant 0 : i32
    %c0_i32_1 = arith.constant 0 : i32
    return %arg0, %c0_i32, %c0_i32_0 : i32, i32, i32
  }
  func.func @transform_3(%arg0: i32, %arg1: i32) -> (i32, i32, i32) {
    %c0_i32 = arith.constant 0 : i32
    %c0_i32_0 = arith.constant 0 : i32
    %c0_i32_1 = arith.constant 0 : i32
    return %arg0, %c0_i32, %c0_i32_0 : i32, i32, i32
  }
}

</mosaic_0001>

<bundles_post_ra>
// kernel: tpu_custom_call.1
= control target key start
LH: loop header
LB: loop body
LE: loop exit
PB: predicated region body
PF: predicated region fallthrough
CT: control target
= control target key end

     0   :  { %9 = vsyncpa [#allocation3], 0  ;;  %s359_s0 = inlined_call_operand.hbm [shape: f32[5,512], index: 0, kind: input, shape index: {}]   ;;  %s360_s1 = inlined_call_operand.hbm [shape: f32[5,512], index: 1, kind: input, shape index: {}]   ;;  %s361_s2 = inlined_call_operand.hbm [shape: f32[1,8,512], index: 2, kind: output, shape index: {0}]   ;;  %s362_s3 = inlined_call_operand.hbm [shape: f32[1,8,512], index: 3, kind: output, shape index: {1}]  }
   0x1   :  { %10 = vsyncpa [#allocation6], 0 }
   0x2   :  { %11 = vsyncpa [#allocation4], 0 }
   0x3   :  { %12 = vsyncpa [#allocation9], 0  ;;  %s279_s12 = smov [#allocation2]   ;;  %s280_s14 = smov [#allocation5]  }
   0x4   :  { %s25_s13 = sshll.u32 %s279_s12, 4  ;;  %s41_s15 = sshll.u32 %s280_s14, 4  ;;  %s26_s13 = int_to_ptr.vmem [resolvable:$true] %s25_s13  ;;  %s42_s15 = int_to_ptr.vmem [resolvable:$true] %s41_s15 }
   0x5   :  { %s183_s18 = scalar_lea.hbm %s359_s0, 512 }
   0x6   :  { %p184_p0 = scmp.ne.s32.totalorder %s359_s0, %s183_s18  ;;  %p187_p1 = scmp.lt.u32.totalorder %s183_s18, %s359_s0 }
   0x8   :  { %p189_p2 = pnand %p187_p1, %p184_p0 }
   0xa   :  { %192 = shalt.err (!%p189_p2)
}
   0xb   :  { %s193_s23 = scalar_lea.vmem %s26_s13, 512  ;;  %p198_p4 = scmp.lt.s32.totalorder %s26_s13, %s26_s13 }
   0xc   :  { %p194_p3 = scmp.ne.s32.totalorder %s26_s13, %s193_s23  ;;  %p199_p5 = scmp.lt.s32.totalorder %s193_s23, %s193_s23 }
   0xe   :  { %p200_p6 = por %p199_p5, %p198_p4 }
  0x10   :  { %p201_p7 = pnand %p200_p6, %p194_p3 }
  0x12   :  { %204 = shalt.err (!%p201_p7)
}
  0x13   :  { %28 = dma.hbm_to_vmem [thread:$0]  %s359_s0, 512, %s26_s13, [#allocation3]  }
  0x14   :  { %s205_s28 = scalar_lea.hbm %s360_s1, 512 }
  0x15   :  { %p206_p8 = scmp.ne.s32.totalorder %s360_s1, %s205_s28  ;;  %p209_p9 = scmp.lt.u32.totalorder %s205_s28, %s360_s1 }
  0x17   :  { %p211_p10 = pnand %p209_p9, %p206_p8 }
  0x19   :  { %214 = shalt.err (!%p211_p10)
}
  0x1a   :  { %s215_s6 = scalar_lea.vmem %s42_s15, 512  ;;  %p220_p12 = scmp.lt.s32.totalorder %s42_s15, %s42_s15 }
  0x1b   :  { %p216_p11 = scmp.ne.s32.totalorder %s42_s15, %s215_s6  ;;  %p221_p13 = scmp.lt.s32.totalorder %s215_s6, %s215_s6 }
  0x1d   :  { %p222_p0 = por %p221_p13, %p220_p12 }
  0x1f   :  { %p223_p1 = pnand %p222_p0, %p216_p11 }
  0x21   :  { %226 = shalt.err (!%p223_p1)
}
  0x22   :  { %44 = dma.hbm_to_vmem [thread:$0]  %s360_s1, 512, %s42_s15, [#allocation6]  }
  0x23   :  { %271 = dma.done.wait [#allocation3], 512  }
  0x24   :  { %272 = vsyncadd [#allocation3], 4294966784 }
  0x25   :  { %273 = dma.done.wait [#allocation6], 512  }
  0x26   :  { %274 = vsyncadd [#allocation6], 4294966784  ;;  %v97_v0 = vlaneseq  ;;  %v73_v2 = vld [vmem:[#allocation2] sm:$0xff]  ;;  %v74_v4 = vld [vmem:[#allocation2 + $0x8] sm:$0xff]  ;;  %s281_s1 = smov [#allocation7]   ;;  %s282_s9 = smov [#allocation8]  }
  0x27   :  { %v79_v3 = vld [vmem:[#allocation5] sm:$0xff]  ;;  %v80_v6 = vld [vmem:[#allocation5 + $0x8] sm:$0xff]  ;;  %v75_v7 = vld [vmem:[#allocation2 + $0x10] sm:$0xff]  ;;  %s150_s8 = sshll.u32 %s281_s1, 4  ;;  %s160_s10 = sshll.u32 %s282_s9, 4  ;;  %s151_s8 = int_to_ptr.vmem [resolvable:$true] %s150_s8  ;;  %s161_s10 = int_to_ptr.vmem [resolvable:$true] %s160_s10 }
  0x28   :  { %v98_v1 = vshrl.u32 %v97_v0, 7  ;;  %v83_v5 = vsub.f32 %v79_v3, %v73_v2  ;;  %v81_v8 = vld [vmem:[#allocation5 + $0x10] sm:$0xff]  ;;  %v91_v9 = vmul.f32 %v79_v3, %v79_v3  ;;  %v84_v10 = vsub.f32 %v80_v6, %v74_v4  ;;  %v76_v12 = vld [vmem:[#allocation2 + $0x18] sm:$0xff]  ;;  %s227_s11 = scalar_lea.vmem %s151_s8, 512  ;;  %p232_p3 = scmp.lt.s32.totalorder %s151_s8, %s151_s8 }
  0x29   :  { %v85_v11 = vsub.f32 %v81_v8, %v75_v7  ;;  %v82_v13 = vld [vmem:[#allocation5 + $0x18] sm:$0xff]  ;;  %v92_v14 = vmul.f32 %v80_v6, %v80_v6  ;;  %v93_v15 = vmul.f32 %v81_v8, %v81_v8  ;;  %p228_p2 = scmp.ne.s32.totalorder %s151_s8, %s227_s11  ;;  %p233_p4 = scmp.lt.s32.totalorder %s227_s11, %s227_s11 }
  0x2a   :  { %vm101_vm0 = vcmp.lt.s32.totalorder %v98_v1, 5  ;;  %v87_v16 = vmul.f32 %v83_v5, %v83_v5  ;;  %v86_v17 = vsub.f32 %v82_v13, %v76_v12  ;;  %v94_v19 = vmul.f32 %v82_v13, %v82_v13 }
  0x2b   :  { %v108_v18 = vsel %vm101_vm0, %v91_v9, 0.0  ;;  %v88_v20 = vmul.f32 %v84_v10, %v84_v10  ;;  %v89_v21 = vmul.f32 %v85_v11, %v85_v11  ;;  %v109_v22 = vsel %vm101_vm0, %v92_v14, 0.0  ;;  %p234_p5 = por %p233_p4, %p232_p3 }
  0x2c   :  { %v104_v23 = vsel %vm101_vm0, %v87_v16, 0.0  ;;  %v90_v24 = vmul.f32 %v86_v17, %v86_v17  ;;  %v110_v25 = vsel %vm101_vm0, %v93_v15, 0.0  ;;  %140 = vst [vmem:[#allocation8] sm:$0xff] %v108_v18  ;;  %141 = vst [vmem:[#allocation8 + $0x8] sm:$0xff] %v109_v22  ;;  %v111_v29 = vsel %vm101_vm0, %v94_v19, 0.0 }
  0x2d   :  { %v105_v26 = vsel %vm101_vm0, %v88_v20, 0.0  ;;  %v106_v27 = vsel %vm101_vm0, %v89_v21, 0.0  ;;  %128 = vst [vmem:[#allocation7] sm:$0xff] %v104_v23  ;;  %142 = vst [vmem:[#allocation8 + $0x10] sm:$0xff] %v110_v25  ;;  %p235_p6 = pnand %p234_p5, %p228_p2 }
  0x2e   :  { %v107_v28 = vsel %vm101_vm0, %v90_v24, 0.0  ;;  %129 = vst [vmem:[#allocation7 + $0x8] sm:$0xff] %v105_v26  ;;  %130 = vst [vmem:[#allocation7 + $0x10] sm:$0xff] %v106_v27 }
  0x2f   :  { %131 = vst [vmem:[#allocation7 + $0x18] sm:$0xff] %v107_v28  ;;  %143 = vst [vmem:[#allocation8 + $0x18] sm:$0xff] %v111_v29 }
  0x30   :  { %238 = shalt.err (!%p235_p6)
}
  0x31   :  { %s239_s14 = scalar_lea.hbm %s361_s2, 512 }
  0x32   :  { %p240_p7 = scmp.ne.s32.totalorder %s361_s2, %s239_s14  ;;  %p243_p8 = scmp.lt.u32.totalorder %s239_s14, %s361_s2 }
  0x34   :  { %p245_p9 = pnand %p243_p8, %p240_p7 }
  0x36   :  { %248 = shalt.err (!%p245_p9)
}
  0x37   :  { %153 = dma.vmem_to_hbm [thread:$0]  %s151_s8, 512, %s361_s2, [#allocation4]  }
  0x38   :  { %s249_s21 = scalar_lea.vmem %s161_s10, 512  ;;  %p254_p11 = scmp.lt.s32.totalorder %s161_s10, %s161_s10 }
  0x39   :  { %p250_p10 = scmp.ne.s32.totalorder %s161_s10, %s249_s21  ;;  %p255_p12 = scmp.lt.s32.totalorder %s249_s21, %s249_s21 }
  0x3b   :  { %p256_p13 = por %p255_p12, %p254_p11 }
  0x3d   :  { %p257_p0 = pnand %p256_p13, %p250_p10 }
  0x3f   :  { %260 = shalt.err (!%p257_p0)
}
  0x40   :  { %s261_s24 = scalar_lea.hbm %s362_s3, 512 }
  0x41   :  { %p262_p1 = scmp.ne.s32.totalorder %s362_s3, %s261_s24  ;;  %p265_p2 = scmp.lt.u32.totalorder %s261_s24, %s362_s3 }
  0x43   :  { %p267_p3 = pnand %p265_p2, %p262_p1 }
  0x45   :  { %270 = shalt.err (!%p267_p3)
}
  0x46   :  { %163 = dma.vmem_to_hbm [thread:$0]  %s161_s10, 512, %s362_s3, [#allocation9]  }
  0x47   :  { %275 = dma.done.wait [#allocation4], 512  }
  0x48   :  { %276 = vsyncadd [#allocation4], 4294966784 }
  0x49   :  { %277 = dma.done.wait [#allocation9], 512  }
  0x4a   :  { %278 = vsyncadd [#allocation9], 4294966784 }
  0x4b   :  { %170 = vsyncpa [#allocation3], 1 }
  0x4c   :  { %171 = vsyncpa [#allocation6], 1 }
  0x4d   :  { %172 = vsyncpa [#allocation4], 1 }
  0x4e   :  { %173 = vsyncpa [#allocation9], 1 }

</bundles_post_ra>
